<compile_context>
chip_gen: v7x
topology: tpu7x:2x2x1
jax: 0.10.0
libtpu: 0.0.40
codegen_flags: <defaults>
</compile_context>

<pallas_src>
import jax
import jax.numpy as jnp
from jax.experimental import pallas as pl
from jax.experimental.pallas import tpu as pltpu


# --------------------------------------------------------------------------
# Kernel: one fused multiply per element; mask is pre-scaled by 1/(1-p).
# --------------------------------------------------------------------------
def _locked_dropout_kernel(x_ref, m_ref, o_ref):
    # m_ref is either (1, C) (broadcast across the row tile) or (tile, C).
    o_ref[...] = (x_ref[...] * m_ref[...]).astype(o_ref.dtype)


def _pick_row_tile(rows, cols, itemsize, target_bytes=2 * 1024 * 1024):
    """Largest multiple-of-8 row tile whose x-tile is <= ~2 MiB (or full rows)."""
    row_bytes = max(1, cols * itemsize)
    if rows * row_bytes <= target_bytes:
        return rows
    tile = max(8, (int(target_bytes // row_bytes) // 8) * 8)
    return min(tile, rows)


def locked_dropout_apply(x, mask):
    """Apply a pre-scaled locked-dropout mask to x with a tiled Pallas kernel.

    x:    [..., C_last] activations (any dtype).
    mask: pre-scaled mask (values in {0, 1/(1-p)}), same dtype as x, with shape
          either equal to x.shape, or (1,) + x.shape[1:] (broadcast over axis 0).
    """
    lead = x.shape[0]
    cols = 1
    for d in x.shape[1:]:
        cols *= d

    x2 = x.reshape(lead, cols)                       # lane-dense 2-D slab
    m2 = mask.reshape(mask.shape[0], cols)           # (1, C) or (rows, C)
    mask_rows = m2.shape[0]

    row_tile = _pick_row_tile(lead, cols, x2.dtype.itemsize)
    grid = (pl.cdiv(lead, row_tile),)

    x_spec = pl.BlockSpec((row_tile, cols), lambda i: (i, 0))
    out_spec = pl.BlockSpec((row_tile, cols), lambda i: (i, 0))
    if mask_rows == 1:
        # Mask block is the whole (1, C) array, resident across all grid steps.
        m_spec = pl.BlockSpec((1, cols), lambda i: (0, 0))
    else:
        m_spec = pl.BlockSpec((row_tile, cols), lambda i: (i, 0))

    y2 = pl.pallas_call(
        _locked_dropout_kernel,
        out_shape=jax.ShapeDtypeStruct((lead, cols), x.dtype),
        grid=grid,
        in_specs=[x_spec, m_spec],
        out_specs=out_spec,
        compiler_params=pltpu.CompilerParams(
            dimension_semantics=("parallel",),        # independent row tiles
            vmem_limit_bytes=32 * 1024 * 1024,        # safe on v5e/v6e/v7x
        ),
    )(x2, m2)

    return y2.reshape(x.shape)


# --------------------------------------------------------------------------
# Stateful wrapper mirroring the PyTorch module's mask-reuse ("locking").
# --------------------------------------------------------------------------
class LockedDropout:
    def __init__(self):
        self.mask = None  # pre-scaled mask, locked until reset_state()

    def reset_state(self):
        self.mask = None

    def __call__(self, x, dropout=0.5, train=True, key=None):
        if not train or dropout == 0.0:
            return x
        if self.mask is None:
            if key is None:
                key = jax.random.PRNGKey(0)
            # For rank>=3 inputs sample one (batch, hidden) slab and broadcast
            # it over the leading (seq) axis == calling the PyTorch module per
            # timestep with the mask locked across calls.
            if x.ndim >= 3:
                mask_shape = (1,) + tuple(x.shape[1:])
            else:
                mask_shape = tuple(x.shape)
            keep = jax.random.bernoulli(key, 1.0 - dropout, mask_shape)
            scale = jnp.asarray(1.0 / (1.0 - dropout), dtype=x.dtype)
            self.mask = keep.astype(x.dtype) * scale
        return locked_dropout_apply(x, self.mask)


# --------------------------------------------------------------------------
# Self-test on small shapes: [seq=8, batch=2, hidden=32]
# --------------------------------------------------------------------------
if __name__ == "__main__":
    dropout = 0.5
    key = jax.random.PRNGKey(0)
    x = jax.random.normal(key, (8, 2, 32), dtype=jnp.float32)

    layer = LockedDropout()

    # train=True: first call samples & locks the mask
    y1 = jax.block_until_ready(layer(x, dropout=dropout, train=True,
                                     key=jax.random.PRNGKey(42)))
    # second call reuses the locked mask (the new key must be ignored)
    y2 = jax.block_until_ready(layer(x, dropout=dropout, train=True,
                                     key=jax.random.PRNGKey(999)))
    # eval mode: identity
    y_eval = jax.block_until_ready(layer(x, dropout=dropout, train=False))

    # --- sanity checks ---
    scale = 1.0 / (1.0 - dropout)
    ratio = y1 / jnp.where(x == 0, 1.0, x)            # should be 0 or scale
    ok_mask_vals = bool(jnp.all(
        jnp.isclose(ratio, 0.0, atol=1e-5) | jnp.isclose(ratio, scale, atol=1e-4)))
    ok_locked = bool(jnp.allclose(y1, y2))
    ok_eval = bool(jnp.allclose(y_eval, x))

    # mask must be identical at every timestep (locked/variational dropout)
    keep_pattern = (y1 != 0)
    ok_time_locked = bool(jnp.all(keep_pattern == keep_pattern[0:1]))

    keep_frac = float(jnp.mean(keep_pattern[0].astype(jnp.float32)))
    ok_rate = 0.15 < keep_frac < 0.85                 # loose check around 1-p

    assert ok_mask_vals, "output values are not x * {0, 1/(1-p)}"
    assert ok_locked, "mask not locked across calls"
    assert ok_eval, "eval mode is not identity"
    assert ok_time_locked, "mask differs across timesteps (not locked dropout)"
    assert ok_rate, f"keep fraction {keep_frac} implausible for p={dropout}"

    print("KERNEL_OK")
</pallas_src>

<mosaic_0001>
module attributes {stable_mosaic.version = 11 : i64} {
  func.func @_locked_dropout_kernel(%arg0: i32, %arg1: memref<8x64xf32, #tpu.memory_space<vmem>>, %arg2: memref<1x64xf32, #tpu.memory_space<vmem>>, %arg3: memref<8x64xf32, #tpu.memory_space<vmem>>) attributes {dimension_semantics = [#tpu.dimension_semantics<parallel>], iteration_bounds = array<i64: 1>, scalar_prefetch = 0 : i64, scratch_operands = 0 : i64, tpu.core_type = #tpu.core_type<tc>, window_params = [{transform_indices = @transform_0, window_bounds = array<i64: 8, 64>}, {pipeline_mode = #tpu.pipeline_mode<synchronous>, transform_indices = @transform_1, window_bounds = array<i64: 1, 64>}, {transform_indices = @transform_2, window_bounds = array<i64: 8, 64>}]} {
    %c0 = arith.constant 0 : index
    %c0_0 = arith.constant 0 : index
    %0 = vector.load %arg1[%c0, %c0_0] : memref<8x64xf32, #tpu.memory_space<vmem>>, vector<8x64xf32>
    %c0_1 = arith.constant 0 : index
    %c0_2 = arith.constant 0 : index
    %1 = vector.load %arg2[%c0_1, %c0_2] : memref<1x64xf32, #tpu.memory_space<vmem>>, vector<1x64xf32>
    %2 = vector.broadcast %1 : vector<1x64xf32> to vector<8x64xf32>
    %3 = arith.mulf %0, %2 : vector<8x64xf32>
    %c0_3 = arith.constant 0 : index
    %c0_4 = arith.constant 0 : index
    %4 = vector.load %arg3[%c0_3, %c0_4] : memref<8x64xf32, #tpu.memory_space<vmem>>, vector<8x64xf32>
    tpu.vector_store %arg3[%c0_3, %c0_4], %3 {strides = array<i32>} : memref<8x64xf32, #tpu.memory_space<vmem>>, vector<8x64xf32>,
    return
  }
  func.func @transform_0(%arg0: i32) -> (i32, i32) {
    %c0_i32 = arith.constant 0 : i32
    %c0_i32_0 = arith.constant 0 : i32
    return %arg0, %c0_i32 : i32, i32
  }
  func.func @transform_1(%arg0: i32) -> (i32, i32) {
    %c0_i32 = arith.constant 0 : i32
    %c0_i32_0 = arith.constant 0 : i32
    %c0_i32_1 = arith.constant 0 : i32
    return %c0_i32, %c0_i32_0 : i32, i32
  }
  func.func @transform_2(%arg0: i32) -> (i32, i32) {
    %c0_i32 = arith.constant 0 : i32
    %c0_i32_0 = arith.constant 0 : i32
    return %arg0, %c0_i32 : i32, i32
  }
}

</mosaic_0001>

<bundles_post_ra>
// kernel: tpu_custom_call.1
= control target key start
LH: loop header
LB: loop body
LE: loop exit
PB: predicated region body
PF: predicated region fallthrough
CT: control target
= control target key end

     0   :  { %7 = vsyncpa [#allocation3], 0  ;;  %s145_s0 = inlined_call_operand.hbm [shape: f32[8,64], index: 0, kind: input, shape index: {}]   ;;  %s146_s1 = inlined_call_operand.vmem [shape: f32[1,64], index: 1, kind: input, shape index: {}]   ;;  %s147_s2 = inlined_call_operand.hbm [shape: f32[8,64], index: 2, kind: output, shape index: {}]  }
   0x1   :  { %8 = vsyncpa [#allocation4], 0  ;;  %s101_s9 = smov [#allocation2]   ;;  %s53_s13 = scalar_lea.hbm %s145_s0, 128 }
   0x2   :  { %s15_s10 = sshll.u32 %s101_s9, 4  ;;  %p54_p0 = scmp.ne.s32.totalorder %s145_s0, %s53_s13  ;;  %s16_s10 = int_to_ptr.vmem [resolvable:$true] %s15_s10 }
   0x3   :  { %p57_p1 = scmp.lt.u32.totalorder %s53_s13, %s145_s0 }
   0x5   :  { %p59_p2 = pnand %p57_p1, %p54_p0 }
   0x7   :  { %62 = shalt.err (!%p59_p2)
}
   0x8   :  { %s63_s18 = scalar_lea.vmem %s16_s10, 128  ;;  %p68_p4 = scmp.lt.s32.totalorder %s16_s10, %s16_s10 }
   0x9   :  { %p64_p3 = scmp.ne.s32.totalorder %s16_s10, %s63_s18  ;;  %p69_p5 = scmp.lt.s32.totalorder %s63_s18, %s63_s18 }
   0xb   :  { %p70_p6 = por %p69_p5, %p68_p4 }
   0xd   :  { %p71_p7 = pnand %p70_p6, %p64_p3 }
   0xf   :  { %74 = shalt.err (!%p71_p7)
}
  0x10   :  { %18 = dma.hbm_to_vmem [thread:$0]  %s145_s0, 128, %s16_s10, [#allocation3]  }
  0x11   :  { %97 = dma.done.wait [#allocation3], 128  }
  0x12   :  { %98 = vsyncadd [#allocation3], 4294967168  ;;  %s102_s21 = smov [#allocation5]   ;;  %v24_v0 = vld [vmem:[#allocation2] sm:$0xff]  ;;  %vm33_vm0 = vcmask 523264  }
  0x13   :  { %s41_s22 = sshll.u32 %s102_s21, 4  ;;  %v50_v1 = vld [vmem:[%s146_s1] ss:$0 sm:$0xff]  ;;  %s42_s22 = int_to_ptr.vmem [resolvable:$true] %s41_s22 }
  0x14   :  { %v32_v2 = vmul.f32 %v50_v1, %v24_v0  ;;  %s75_s25 = scalar_lea.vmem %s42_s22, 128  ;;  %p80_p9 = scmp.lt.s32.totalorder %s42_s22, %s42_s22 }
  0x15   :  { %p76_p8 = scmp.ne.s32.totalorder %s42_s22, %s75_s25  ;;  %p81_p10 = scmp.lt.s32.totalorder %s75_s25, %s75_s25 }
  0x16   :  { %34 = vst.msk [vmem:[#allocation5] sm:$0xff] %vm33_vm0, %v32_v2 }
  0x17   :  { %p82_p11 = por %p81_p10, %p80_p9 }
  0x19   :  { %p83_p12 = pnand %p82_p11, %p76_p8 }
  0x1b   :  { %86 = shalt.err (!%p83_p12)
}
  0x1c   :  { %s87_s27 = scalar_lea.hbm %s147_s2, 128 }
  0x1d   :  { %p88_p13 = scmp.ne.s32.totalorder %s147_s2, %s87_s27  ;;  %p91_p0 = scmp.lt.u32.totalorder %s87_s27, %s147_s2 }
  0x1f   :  { %p93_p1 = pnand %p91_p0, %p88_p13 }
  0x21   :  { %96 = shalt.err (!%p93_p1)
}
  0x22   :  { %44 = dma.vmem_to_hbm [thread:$0]  %s42_s22, 128, %s147_s2, [#allocation4]  }
  0x23   :  { %99 = dma.done.wait [#allocation4], 128  }
  0x24   :  { %100 = vsyncadd [#allocation4], 4294967168 }
  0x25   :  { %48 = vsyncpa [#allocation3], 1 }
  0x26   :  { %49 = vsyncpa [#allocation4], 1 }

</bundles_post_ra>
